<compile_context>
chip_gen: v6e
topology: v6e:2x2x1
jax: 0.10.0
libtpu: 0.0.40
codegen_flags: <defaults>
</compile_context>

<pallas_src>
import functools

import jax
import jax.numpy as jnp
import numpy as np
from jax.experimental import pallas as pl
from jax.experimental.pallas import tpu as pltpu

LOG_SCALE_MIN = -5.0
LOG_SCALE_MAX = 3.0


def _round_up(x, m):
    return (x + m - 1) // m * m


def _normflow_kernel(z_ref, w1_ref, b1_ref, w2_ref, b2_ref,
                     z_out_ref, lj_out_ref, *, num_flows, hidden_dim):
    """All flows fused; static Python loop (num_flows is tiny & compile-time).

    Transposed (batch-on-lanes) layout:
      z_ref  : (D,  Nb)    w1_ref : (F, Hp, D)   b1_ref : (F, Hp, 1)
      w2_ref : (F, 2D, Hp) b2_ref : (F, 2D, 1)
    """
    D = hidden_dim
    z = z_ref[...]                                   # (D, Nb) f32
    lj = jnp.zeros((1, z.shape[1]), jnp.float32)     # lane-dense log-jacobian row

    for i in range(num_flows):
        # Layer 1 (x1-gather folded into the weight): h = relu(W1t @ z + b1)
        h = jnp.maximum(
            jnp.dot(w1_ref[i], z, preferred_element_type=jnp.float32)
            + b1_ref[i], 0.0)                        # (Hp, Nb)

        # Layer 2, fused mean/log_scale + scatter folded into the weights:
        # rows [0, D)  -> mean_full, rows [D, 2D) -> raw log_scale_full.
        out = jnp.dot(w2_ref[i], h, preferred_element_type=jnp.float32) \
            + b2_ref[i]                              # (2D, Nb)
        mean = out[:D, :]
        log_scale = jnp.clip(out[D:, :], LOG_SCALE_MIN, LOG_SCALE_MAX)

        # x1 positions: mean 0, log_scale 0 -> exp 1 -> identity; x2 positions
        # get the affine coupling update.  No concat / gather / scatter.
        z = jnp.exp(log_scale) * z + mean
        lj = lj + jnp.sum(log_scale, axis=0, keepdims=True)   # sublane reduce

    z_out_ref[...] = z
    lj_out_ref[...] = lj


def prepare_normflow_params(w1, b1, w2, b2, *, hidden_dim, split_dim,
                            need_permute, hidden_pad=8):
    """Fold permutations + x2 scatter into the weights; transpose for the
    batch-on-lanes kernel layout.

    Inputs (original DenseNN params, stacked over flows):
      w1: (F, split, H)   b1: (F, 1, H)  (or (F, H))
      w2: (F, H, 2*d2)    b2: (F, 1, 2*d2)
    Returns (w1t, b1t, w2t, b2t):
      w1t: (F, Hp, D)   b1t: (F, Hp, 1)
      w2t: (F, 2D, Hp)  b2t: (F, 2D, 1)   (rows [0,D)=mean, [D,2D)=log_scale)
    """
    w1 = np.asarray(w1, np.float32)
    F, split, H = w1.shape
    b1 = np.asarray(b1, np.float32).reshape(F, -1)
    w2 = np.asarray(w2, np.float32)
    b2 = np.asarray(b2, np.float32).reshape(F, -1)

    D = hidden_dim
    d2 = D - split_dim
    Hp = _round_up(max(H, hidden_pad), hidden_pad)   # 15 -> 16 (sublane aligned)

    even = np.arange(0, D, 2)
    odd = np.arange(1, D, 2)
    eo = np.concatenate([even, odd])
    oe = np.concatenate([odd, even])
    eye = np.eye(D, dtype=np.float32)

    w1t = np.zeros((F, Hp, D), np.float32)
    b1t = np.zeros((F, Hp, 1), np.float32)
    w2t = np.zeros((F, 2 * D, Hp), np.float32)
    b2t = np.zeros((F, 2 * D, 1), np.float32)

    for i in range(F):
        if need_permute:
            fwd = eo if i % 2 == 0 else oe
        else:
            fwd = np.arange(D)
        x1_pos = fwd[:split_dim]
        x2_pos = fwd[split_dim:]

        # Layer 1: fold the x1-gather (z @ P1 == x1) and transpose -> (Hp, D).
        P1 = eye[:, x1_pos]                          # (D, split)
        w1t[i, :H, :] = (P1 @ w1[i]).T
        b1t[i, :H, 0] = b1[i]

        # Layer 2: split mean / log_scale halves, scatter the d2 outputs to
        # their x2 positions in a full-width D output (x1 rows stay all-zero,
        # including the bias), stack [mean; log_scale], transpose -> (2D, Hp).
        w2t[i, x2_pos, :H] = w2[i][:, :d2].T         # mean rows
        w2t[i, D + x2_pos, :H] = w2[i][:, d2:].T     # log_scale rows
        b2t[i, x2_pos, 0] = b2[i][:d2]
        b2t[i, D + x2_pos, 0] = b2[i][d2:]

    return tuple(jnp.asarray(a) for a in (w1t, b1t, w2t, b2t))


def _choose_batch_block(B):
    """Lane-dense (multiple-of-128) batch blocks; >=4 grid steps for large B
    so the 'parallel' batch axis shards across v7x's two TensorCores and the
    z DMA pipelines.  Per-block VMEM is tiny (<1 MiB), well under every
    generation's scoped default."""
    if B <= 512:
        return _round_up(B, 128)
    return min(_round_up((B + 3) // 4, 128), 2048)


def normflow_forward(z, packed_params, *, batch_block=None):
    w1t, b1t, w2t, b2t = packed_params
    B, D = z.shape
    F, Hp, _ = w1t.shape

    if batch_block is None:
        batch_block = _choose_batch_block(B)
    Bp = _round_up(B, batch_block)
    grid = (Bp // batch_block,)

    # Batch-on-lanes layout; pad the batch (lane) axis to the block multiple.
    zt = jnp.zeros((D, Bp), jnp.float32).at[:, :B].set(z.astype(jnp.float32).T)

    kernel = functools.partial(_normflow_kernel, num_flows=F, hidden_dim=D)
    full3 = lambda b: (0, 0, 0)   # whole stacked-weight block, fetched once

    zt_out, lj = pl.pallas_call(
        kernel,
        out_shape=(jax.ShapeDtypeStruct((D, Bp), jnp.float32),
                   jax.ShapeDtypeStruct((1, Bp), jnp.float32)),
        grid_spec=pltpu.PrefetchScalarGridSpec(
            num_scalar_prefetch=0,
            grid=grid,
            in_specs=[
                pl.BlockSpec((D, batch_block), lambda b: (0, b)),  # z (batch-tiled)
                pl.BlockSpec((F, Hp, D), full3),                   # W1t (folded gather)
                pl.BlockSpec((F, Hp, 1), full3),                   # b1t
                pl.BlockSpec((F, 2 * D, Hp), full3),               # [W2 mean; log_scale]
                pl.BlockSpec((F, 2 * D, 1), full3),                # [b2 mean; log_scale]
            ],
            out_specs=[
                pl.BlockSpec((D, batch_block), lambda b: (0, b)),
                pl.BlockSpec((1, batch_block), lambda b: (0, b)),
            ],
        ),
        compiler_params=pltpu.CompilerParams(
            dimension_semantics=("parallel",)),   # batch blocks shard across TCs (v7x)
    )(zt, w1t, b1t, w2t, b2t)

    # Drop batch padding; transpose back to the (B, D) convention.
    return zt_out[:, :B].T, lj[0, :B]


# ---------------------------------------------------------------------------
# Reference (pure JAX, original unfolded weights + index permutations).
# ---------------------------------------------------------------------------
def _make_perm_indices(hidden_dim, num_flows):
    even = [i for i in range(0, hidden_dim, 2)]
    odd = [i for i in range(1, hidden_dim, 2)]
    eo = np.array(even + odd, dtype=np.int64)
    oe = np.array(odd + even, dtype=np.int64)
    undo_eo = np.array([i // 2 if i % 2 == 0 else i // 2 + len(even)
                        for i in range(hidden_dim)], dtype=np.int64)
    undo_oe = np.array([i // 2 + len(odd) if i % 2 == 0 else i // 2
                        for i in range(hidden_dim)], dtype=np.int64)
    fwd_idx, inv_idx = [], []
    for i in range(num_flows):
        fwd_idx.append(eo if i % 2 == 0 else oe)
        inv_idx.append(undo_eo if i % 2 == 0 else undo_oe)
    return np.stack(fwd_idx), np.stack(inv_idx)


def _reference(z, w1, b1, w2, b2, fwd_idx, inv_idx, split_dim, need_permute):
    lj = jnp.zeros(z.shape[0], jnp.float32)
    for i in range(w1.shape[0]):
        if need_permute:
            z = z[:, fwd_idx[i]]
        x1, x2 = z[:, :split_dim], z[:, split_dim:]
        d2 = z.shape[1] - split_dim
        h = jax.nn.relu(x1 @ w1[i] + b1[i, 0])
        out = h @ w2[i] + b2[i, 0]
        mean = out[:, :d2]
        log_scale = jnp.clip(out[:, d2:], LOG_SCALE_MIN, LOG_SCALE_MAX)
        z_new = jnp.concatenate([x1, jnp.exp(log_scale) * x2 + mean], axis=-1)
        lj = lj + log_scale.sum(-1)
        if need_permute:
            z_new = z_new[:, inv_idx[i]]
        z = z_new
    return z, lj


def _run_case(key, B, hidden_dim, num_flows, need_permute):
    split_dim = hidden_dim // 2
    d2 = hidden_dim - split_dim
    params = min(hidden_dim, 15)          # DenseNN hidden width

    kz, kw1, kb1, kw2, kb2 = jax.random.split(key, 5)
    z = jax.random.normal(kz, (B, hidden_dim), dtype=jnp.float32)
    w1 = 0.2 * jax.random.normal(kw1, (num_flows, split_dim, params), dtype=jnp.float32)
    b1 = 0.1 * jax.random.normal(kb1, (num_flows, 1, params), dtype=jnp.float32)
    w2 = 0.2 * jax.random.normal(kw2, (num_flows, params, 2 * d2), dtype=jnp.float32)
    b2 = 0.1 * jax.random.normal(kb2, (num_flows, 1, 2 * d2), dtype=jnp.float32)

    packed = prepare_normflow_params(
        w1, b1, w2, b2,
        hidden_dim=hidden_dim, split_dim=split_dim, need_permute=need_permute)

    z_out, log_jacob = normflow_forward(z, packed)
    z_out = jax.block_until_ready(z_out)
    log_jacob = jax.block_until_ready(log_jacob)

    fwd_idx, inv_idx = _make_perm_indices(hidden_dim, num_flows)
    z_ref, lj_ref = _reference(z, w1, b1, w2, b2, fwd_idx, inv_idx,
                               split_dim, need_permute)
    np.testing.assert_allclose(np.asarray(z_out), np.asarray(z_ref),
                               rtol=1e-5, atol=1e-5)
    np.testing.assert_allclose(np.asarray(log_jacob), np.asarray(lj_ref),
                               rtol=1e-5, atol=1e-5)


if __name__ == "__main__":
    key = jax.random.PRNGKey(0)
    k1, k2 = jax.random.split(key)

    # Small deterministic configuration (matches the module defaults-ish).
    _run_case(k1, B=8, hidden_dim=32, num_flows=3, need_permute=True)
    # Second case exercising batch padding and the no-permute path.
    _run_case(k2, B=200, hidden_dim=32, num_flows=2, need_permute=False)

    print("KERNEL_OK")
</pallas_src>

<mosaic_0001>
module attributes {stable_mosaic.version = 11 : i64} {
  func.func @_normflow_kernel(%arg0: i32, %arg1: memref<32x128xf32, #tpu.memory_space<vmem>>, %arg2: memref<3x16x32xf32, #tpu.memory_space<vmem>>, %arg3: memref<3x16x1xf32, #tpu.memory_space<vmem>>, %arg4: memref<3x64x16xf32, #tpu.memory_space<vmem>>, %arg5: memref<3x64x1xf32, #tpu.memory_space<vmem>>, %arg6: memref<32x128xf32, #tpu.memory_space<vmem>>, %arg7: memref<1x128xf32, #tpu.memory_space<vmem>>) attributes {dimension_semantics = [#tpu.dimension_semantics<parallel>], iteration_bounds = array<i64: 1>, scalar_prefetch = 0 : i64, scratch_operands = 0 : i64, tpu.core_type = #tpu.core_type<tc>, window_params = [{transform_indices = @transform_0, window_bounds = array<i64: 32, 128>}, {pipeline_mode = #tpu.pipeline_mode<synchronous>, transform_indices = @transform_1, window_bounds = array<i64: 3, 16, 32>}, {pipeline_mode = #tpu.pipeline_mode<synchronous>, transform_indices = @transform_2, window_bounds = array<i64: 3, 16, 1>}, {pipeline_mode = #tpu.pipeline_mode<synchronous>, transform_indices = @transform_3, window_bounds = array<i64: 3, 64, 16>}, {pipeline_mode = #tpu.pipeline_mode<synchronous>, transform_indices = @transform_4, window_bounds = array<i64: 3, 64, 1>}, {transform_indices = @transform_5, window_bounds = array<i64: 32, 128>}, {transform_indices = @transform_6, window_bounds = array<i64: 1, 128>}]} {
    %c0 = arith.constant 0 : index
    %c0_0 = arith.constant 0 : index
    %0 = vector.load %arg1[%c0, %c0_0] : memref<32x128xf32, #tpu.memory_space<vmem>>, vector<32x128xf32>
    %cst = arith.constant 0.000000e+00 : f32
    %1 = vector.broadcast %cst : f32 to vector<1x128xf32>
    %c0_1 = arith.constant 0 : index
    %c0_2 = arith.constant 0 : index
    %c0_3 = arith.constant 0 : index
    %2 = vector.load %arg2[%c0_1, %c0_2, %c0_3] : memref<3x16x32xf32, #tpu.memory_space<vmem>>, vector<1x16x32xf32>
    %3 = vector.shape_cast %2 : vector<1x16x32xf32> to vector<16x32xf32>
    %cst_4 = arith.constant dense<0.000000e+00> : vector<16x128xf32>
    %4 = tpu.matmul %3, %0, %cst_4 {dimension_numbers = #tpu.dot_dimension_numbers<[1], [0], [0], [1], [0, 0, 1, 1], [], []>} : vector<16x32xf32>, vector<32x128xf32>, vector<16x128xf32> -> vector<16x128xf32>
    %c0_5 = arith.constant 0 : index
    %c0_6 = arith.constant 0 : index
    %c0_7 = arith.constant 0 : index
    %5 = vector.load %arg3[%c0_5, %c0_6, %c0_7] : memref<3x16x1xf32, #tpu.memory_space<vmem>>, vector<1x16x1xf32>
    %6 = vector.shape_cast %5 : vector<1x16x1xf32> to vector<16x1xf32>
    %7 = vector.broadcast %6 : vector<16x1xf32> to vector<16x128xf32>
    %8 = arith.addf %4, %7 : vector<16x128xf32>
    %cst_8 = arith.constant 0.000000e+00 : f32
    %9 = vector.broadcast %cst_8 : f32 to vector<16x128xf32>
    %10 = arith.maximumf %8, %9 : vector<16x128xf32>
    %c0_9 = arith.constant 0 : index
    %c0_10 = arith.constant 0 : index
    %c0_11 = arith.constant 0 : index
    %11 = vector.load %arg4[%c0_9, %c0_10, %c0_11] : memref<3x64x16xf32, #tpu.memory_space<vmem>>, vector<1x64x16xf32>
    %12 = vector.shape_cast %11 : vector<1x64x16xf32> to vector<64x16xf32>
    %cst_12 = arith.constant dense<0.000000e+00> : vector<64x128xf32>
    %13 = tpu.matmul %12, %10, %cst_12 {dimension_numbers = #tpu.dot_dimension_numbers<[1], [0], [0], [1], [0, 0, 1, 1], [], []>} : vector<64x16xf32>, vector<16x128xf32>, vector<64x128xf32> -> vector<64x128xf32>
    %c0_13 = arith.constant 0 : index
    %c0_14 = arith.constant 0 : index
    %c0_15 = arith.constant 0 : index
    %14 = vector.load %arg5[%c0_13, %c0_14, %c0_15] : memref<3x64x1xf32, #tpu.memory_space<vmem>>, vector<1x64x1xf32>
    %15 = vector.shape_cast %14 : vector<1x64x1xf32> to vector<64x1xf32>
    %16 = vector.broadcast %15 : vector<64x1xf32> to vector<64x128xf32>
    %17 = arith.addf %13, %16 : vector<64x128xf32>
    %18 = vector.extract_strided_slice %17 {offsets = [0, 0], sizes = [32, 128], strides = [1, 1]} : vector<64x128xf32> to vector<32x128xf32>
    %19 = vector.extract_strided_slice %17 {offsets = [32, 0], sizes = [32, 128], strides = [1, 1]} : vector<64x128xf32> to vector<32x128xf32>
    %cst_16 = arith.constant -5.000000e+00 : f32
    %cst_17 = arith.constant 3.000000e+00 : f32
    %20 = vector.broadcast %cst_16 : f32 to vector<32x128xf32>
    %21 = arith.maximumf %20, %19 : vector<32x128xf32>
    %22 = vector.broadcast %cst_17 : f32 to vector<32x128xf32>
    %23 = arith.minimumf %22, %21 : vector<32x128xf32>
    %24 = math.exp %23 : vector<32x128xf32>
    %25 = arith.mulf %24, %0 : vector<32x128xf32>
    %26 = arith.addf %25, %18 : vector<32x128xf32>
    %cst_18 = arith.constant dense<0.000000e+00> : vector<128xf32>
    %27 = vector.multi_reduction <add>, %23, %cst_18 [0] : vector<32x128xf32> to vector<128xf32>
    %28 = vector.shape_cast %27 : vector<128xf32> to vector<1x128xf32>
    %29 = arith.addf %1, %28 : vector<1x128xf32>
    %c1 = arith.constant 1 : index
    %c0_19 = arith.constant 0 : index
    %c0_20 = arith.constant 0 : index
    %30 = vector.load %arg2[%c1, %c0_19, %c0_20] : memref<3x16x32xf32, #tpu.memory_space<vmem>>, vector<1x16x32xf32>
    %31 = vector.shape_cast %30 : vector<1x16x32xf32> to vector<16x32xf32>
    %cst_21 = arith.constant dense<0.000000e+00> : vector<16x128xf32>
    %32 = tpu.matmul %31, %26, %cst_21 {dimension_numbers = #tpu.dot_dimension_numbers<[1], [0], [0], [1], [0, 0, 1, 1], [], []>} : vector<16x32xf32>, vector<32x128xf32>, vector<16x128xf32> -> vector<16x128xf32>
    %c1_22 = arith.constant 1 : index
    %c0_23 = arith.constant 0 : index
    %c0_24 = arith.constant 0 : index
    %33 = vector.load %arg3[%c1_22, %c0_23, %c0_24] : memref<3x16x1xf32, #tpu.memory_space<vmem>>, vector<1x16x1xf32>
    %34 = vector.shape_cast %33 : vector<1x16x1xf32> to vector<16x1xf32>
    %35 = vector.broadcast %34 : vector<16x1xf32> to vector<16x128xf32>
    %36 = arith.addf %32, %35 : vector<16x128xf32>
    %cst_25 = arith.constant 0.000000e+00 : f32
    %37 = vector.broadcast %cst_25 : f32 to vector<16x128xf32>
    %38 = arith.maximumf %36, %37 : vector<16x128xf32>
    %c1_26 = arith.constant 1 : index
    %c0_27 = arith.constant 0 : index
    %c0_28 = arith.constant 0 : index
    %39 = vector.load %arg4[%c1_26, %c0_27, %c0_28] : memref<3x64x16xf32, #tpu.memory_space<vmem>>, vector<1x64x16xf32>
    %40 = vector.shape_cast %39 : vector<1x64x16xf32> to vector<64x16xf32>
    %cst_29 = arith.constant dense<0.000000e+00> : vector<64x128xf32>
    %41 = tpu.matmul %40, %38, %cst_29 {dimension_numbers = #tpu.dot_dimension_numbers<[1], [0], [0], [1], [0, 0, 1, 1], [], []>} : vector<64x16xf32>, vector<16x128xf32>, vector<64x128xf32> -> vector<64x128xf32>
    %c1_30 = arith.constant 1 : index
    %c0_31 = arith.constant 0 : index
    %c0_32 = arith.constant 0 : index
    %42 = vector.load %arg5[%c1_30, %c0_31, %c0_32] : memref<3x64x1xf32, #tpu.memory_space<vmem>>, vector<1x64x1xf32>
    %43 = vector.shape_cast %42 : vector<1x64x1xf32> to vector<64x1xf32>
    %44 = vector.broadcast %43 : vector<64x1xf32> to vector<64x128xf32>
    %45 = arith.addf %41, %44 : vector<64x128xf32>
    %46 = vector.extract_strided_slice %45 {offsets = [0, 0], sizes = [32, 128], strides = [1, 1]} : vector<64x128xf32> to vector<32x128xf32>
    %47 = vector.extract_strided_slice %45 {offsets = [32, 0], sizes = [32, 128], strides = [1, 1]} : vector<64x128xf32> to vector<32x128xf32>
    %cst_33 = arith.constant -5.000000e+00 : f32
    %cst_34 = arith.constant 3.000000e+00 : f32
    %48 = vector.broadcast %cst_33 : f32 to vector<32x128xf32>
    %49 = arith.maximumf %48, %47 : vector<32x128xf32>
    %50 = vector.broadcast %cst_34 : f32 to vector<32x128xf32>
    %51 = arith.minimumf %50, %49 : vector<32x128xf32>
    %52 = math.exp %51 : vector<32x128xf32>
    %53 = arith.mulf %52, %26 : vector<32x128xf32>
    %54 = arith.addf %53, %46 : vector<32x128xf32>
    %cst_35 = arith.constant dense<0.000000e+00> : vector<128xf32>
    %55 = vector.multi_reduction <add>, %51, %cst_35 [0] : vector<32x128xf32> to vector<128xf32>
    %56 = vector.shape_cast %55 : vector<128xf32> to vector<1x128xf32>
    %57 = arith.addf %29, %56 : vector<1x128xf32>
    %c2 = arith.constant 2 : index
    %c0_36 = arith.constant 0 : index
    %c0_37 = arith.constant 0 : index
    %58 = vector.load %arg2[%c2, %c0_36, %c0_37] : memref<3x16x32xf32, #tpu.memory_space<vmem>>, vector<1x16x32xf32>
    %59 = vector.shape_cast %58 : vector<1x16x32xf32> to vector<16x32xf32>
    %cst_38 = arith.constant dense<0.000000e+00> : vector<16x128xf32>
    %60 = tpu.matmul %59, %54, %cst_38 {dimension_numbers = #tpu.dot_dimension_numbers<[1], [0], [0], [1], [0, 0, 1, 1], [], []>} : vector<16x32xf32>, vector<32x128xf32>, vector<16x128xf32> -> vector<16x128xf32>
    %c2_39 = arith.constant 2 : index
    %c0_40 = arith.constant 0 : index
    %c0_41 = arith.constant 0 : index
    %61 = vector.load %arg3[%c2_39, %c0_40, %c0_41] : memref<3x16x1xf32, #tpu.memory_space<vmem>>, vector<1x16x1xf32>
    %62 = vector.shape_cast %61 : vector<1x16x1xf32> to vector<16x1xf32>
    %63 = vector.broadcast %62 : vector<16x1xf32> to vector<16x128xf32>
    %64 = arith.addf %60, %63 : vector<16x128xf32>
    %cst_42 = arith.constant 0.000000e+00 : f32
    %65 = vector.broadcast %cst_42 : f32 to vector<16x128xf32>
    %66 = arith.maximumf %64, %65 : vector<16x128xf32>
    %c2_43 = arith.constant 2 : index
    %c0_44 = arith.constant 0 : index
    %c0_45 = arith.constant 0 : index
    %67 = vector.load %arg4[%c2_43, %c0_44, %c0_45] : memref<3x64x16xf32, #tpu.memory_space<vmem>>, vector<1x64x16xf32>
    %68 = vector.shape_cast %67 : vector<1x64x16xf32> to vector<64x16xf32>
    %cst_46 = arith.constant dense<0.000000e+00> : vector<64x128xf32>
    %69 = tpu.matmul %68, %66, %cst_46 {dimension_numbers = #tpu.dot_dimension_numbers<[1], [0], [0], [1], [0, 0, 1, 1], [], []>} : vector<64x16xf32>, vector<16x128xf32>, vector<64x128xf32> -> vector<64x128xf32>
    %c2_47 = arith.constant 2 : index
    %c0_48 = arith.constant 0 : index
    %c0_49 = arith.constant 0 : index
    %70 = vector.load %arg5[%c2_47, %c0_48, %c0_49] : memref<3x64x1xf32, #tpu.memory_space<vmem>>, vector<1x64x1xf32>
    %71 = vector.shape_cast %70 : vector<1x64x1xf32> to vector<64x1xf32>
    %72 = vector.broadcast %71 : vector<64x1xf32> to vector<64x128xf32>
    %73 = arith.addf %69, %72 : vector<64x128xf32>
    %74 = vector.extract_strided_slice %73 {offsets = [0, 0], sizes = [32, 128], strides = [1, 1]} : vector<64x128xf32> to vector<32x128xf32>
    %75 = vector.extract_strided_slice %73 {offsets = [32, 0], sizes = [32, 128], strides = [1, 1]} : vector<64x128xf32> to vector<32x128xf32>
    %cst_50 = arith.constant -5.000000e+00 : f32
    %cst_51 = arith.constant 3.000000e+00 : f32
    %76 = vector.broadcast %cst_50 : f32 to vector<32x128xf32>
    %77 = arith.maximumf %76, %75 : vector<32x128xf32>
    %78 = vector.broadcast %cst_51 : f32 to vector<32x128xf32>
    %79 = arith.minimumf %78, %77 : vector<32x128xf32>
    %80 = math.exp %79 : vector<32x128xf32>
    %81 = arith.mulf %80, %54 : vector<32x128xf32>
    %82 = arith.addf %81, %74 : vector<32x128xf32>
    %cst_52 = arith.constant dense<0.000000e+00> : vector<128xf32>
    %83 = vector.multi_reduction <add>, %79, %cst_52 [0] : vector<32x128xf32> to vector<128xf32>
    %84 = vector.shape_cast %83 : vector<128xf32> to vector<1x128xf32>
    %85 = arith.addf %57, %84 : vector<1x128xf32>
    %c0_53 = arith.constant 0 : index
    %c0_54 = arith.constant 0 : index
    %86 = vector.load %arg6[%c0_53, %c0_54] : memref<32x128xf32, #tpu.memory_space<vmem>>, vector<32x128xf32>
    tpu.vector_store %arg6[%c0_53, %c0_54], %82 {strides = array<i32>} : memref<32x128xf32, #tpu.memory_space<vmem>>, vector<32x128xf32>,
    %c0_55 = arith.constant 0 : index
    %c0_56 = arith.constant 0 : index
    %87 = vector.load %arg7[%c0_55, %c0_56] : memref<1x128xf32, #tpu.memory_space<vmem>>, vector<1x128xf32>
    tpu.vector_store %arg7[%c0_55, %c0_56], %85 {strides = array<i32>} : memref<1x128xf32, #tpu.memory_space<vmem>>, vector<1x128xf32>,
    return
  }
  func.func @transform_0(%arg0: i32) -> (i32, i32) {
    %c0_i32 = arith.constant 0 : i32
    %c0_i32_0 = arith.constant 0 : i32
    return %c0_i32, %arg0 : i32, i32
  }
  func.func @transform_1(%arg0: i32) -> (i32, i32, i32) {
    %c0_i32 = arith.constant 0 : i32
    %c0_i32_0 = arith.constant 0 : i32
    %c0_i32_1 = arith.constant 0 : i32
    %c0_i32_2 = arith.constant 0 : i32
    return %c0_i32, %c0_i32_0, %c0_i32_1 : i32, i32, i32
  }
  func.func @transform_2(%arg0: i32) -> (i32, i32, i32) {
    %c0_i32 = arith.constant 0 : i32
    %c0_i32_0 = arith.constant 0 : i32
    %c0_i32_1 = arith.constant 0 : i32
    %c0_i32_2 = arith.constant 0 : i32
    return %c0_i32, %c0_i32_0, %c0_i32_1 : i32, i32, i32
  }
  func.func @transform_3(%arg0: i32) -> (i32, i32, i32) {
    %c0_i32 = arith.constant 0 : i32
    %c0_i32_0 = arith.constant 0 : i32
    %c0_i32_1 = arith.constant 0 : i32
    %c0_i32_2 = arith.constant 0 : i32
    return %c0_i32, %c0_i32_0, %c0_i32_1 : i32, i32, i32
  }
  func.func @transform_4(%arg0: i32) -> (i32, i32, i32) {
    %c0_i32 = arith.constant 0 : i32
    %c0_i32_0 = arith.constant 0 : i32
    %c0_i32_1 = arith.constant 0 : i32
    %c0_i32_2 = arith.constant 0 : i32
    return %c0_i32, %c0_i32_0, %c0_i32_1 : i32, i32, i32
  }
  func.func @transform_5(%arg0: i32) -> (i32, i32) {
    %c0_i32 = arith.constant 0 : i32
    %c0_i32_0 = arith.constant 0 : i32
    return %c0_i32, %arg0 : i32, i32
  }
  func.func @transform_6(%arg0: i32) -> (i32, i32) {
    %c0_i32 = arith.constant 0 : i32
    %c0_i32_0 = arith.constant 0 : i32
    return %c0_i32, %arg0 : i32, i32
  }
}

</mosaic_0001>

<bundles_post_ra>
// kernel: tpu_custom_call.1
= control target key start
LH: loop header
LB: loop body
LE: loop exit
PB: predicated region body
PF: predicated region fallthrough
CT: control target
= control target key end

     0   :  { %12 = vsyncpa [#allocation3], 0  ;;  %vm42_vm0 = vcmask 261120   ;;  %v1295_v3 = vmov 0   ;;  %s1633_s0 = inlined_call_operand.vmem [shape: f32[32,128], index: 0, kind: input, shape index: {}]   ;;  %s1634_s1 = inlined_call_operand.vmem [shape: f32[3,16,32], index: 1, kind: input, shape index: {}]   ;;  %s1635_s2 = inlined_call_operand.vmem [shape: f32[3,16,1], index: 2, kind: input, shape index: {}]   ;;  %s1636_s3 = inlined_call_operand.vmem [shape: f32[3,64,16], index: 3, kind: input, shape index: {}]   ;;  %s1637_s4 = inlined_call_operand.vmem [shape: f32[3,64,1], index: 4, kind: input, shape index: {}]   ;;  %s1638_s5 = inlined_call_operand.hbm [shape: f32[32,128], index: 5, kind: output, shape index: {0}]   ;;  %s1639_s6 = inlined_call_operand.hbm [shape: f32[1,128], index: 6, kind: output, shape index: {1}]  }
   0x1   :  { %v1338_v0 = vld [vmem:[%s1633_s0 + $0x18] sm:$0xff]  ;;  %v1343_v1 = vld [vmem:[%s1633_s0 + $0x10] sm:$0xff]  ;;  %v28_v2 = vld [vmem:[%s1634_s1] sm:$0xff]  ;;  %1225 = vset.pattern.permute.xlu0 %v1295_v3  ;;  %1226 = vset.pattern.permute.xlu1 %v1295_v3 }
   0x2   :  { %1139 = vmatprep.subr.mxu0 %v1338_v0  ;;  %v1353_v4 = vld [vmem:[%s1633_s0 + $0x8] sm:$0xff]  ;;  %1147 = vmatprep.mubr.msk.f32.mxu0 %vm42_vm0, %v28_v2  ;;  %v1364_v6 = vld [vmem:[%s1633_s0] sm:$0xff] }
   0x3   :  { %1140 = vmatpush3.msra.mxu0 %v1338_v0  ;;  %v31_v5 = vld [vmem:[%s1635_s2 + $0x8] sm:$0xff]  ;;  %v30_v7 = vld [vmem:[%s1635_s2] sm:$0xff] }
   0x4   :  { %1141 = vmatprep.subr.mxu0 %v1343_v1  ;;  %39 = vperm.xlu0 %1225, %v31_v5   ;;  %v29_v8 = vld [vmem:[%s1634_s1 + $0x8] sm:$0xff] }
   0x5   :  { %1142 = vmatpush3.msra.mxu0 %v1343_v1 }
   0x6   :  { %1143 = vmatprep.subr.mxu0 %v1353_v4 }
   0x7   :  { %1144 = vmatpush3.msra.mxu0 %v1353_v4 }
   0x8   :  { %1145 = vmatprep.subr.mxu0 %v1364_v6  ;;  %34 = vperm.xlu0 %1225, %v30_v7  }
   0x9   :  { %13 = vsyncpa [#allocation5], 0  ;;  %1146 = vmatpush3.msra.mxu0 %v1364_v6  ;;  %v139_v9 = vld [vmem:[%s1637_s4 + $0x28] sm:$0xff]  ;;  %v137_v10 = vld [vmem:[%s1637_s4 + $0x18] sm:$0xff]  ;;  %vm182_vm1 = vcmask 130048  }
   0xa   :  { %1148 = vmatmul.mubr.msk.f32.vlgmr.msra.gmra.mxu0 %vm42_vm0, %v29_v8  ;;  %v135_v11 = vld [vmem:[%s1637_s4 + $0x8] sm:$0xff]  ;;  %v1034_v12 = vld [vmem:[%s1635_s2 + $0x18] sm:$0xff]  ;;  %v1079_v18 = vld [vmem:[%s1637_s4 + $0xa0] sm:$0xff] }
   0xb   :  { %v1052_v13 = vld [vmem:[%s1637_s4 + $0x78] sm:$0xff]  ;;  %v1050_v14 = vld [vmem:[%s1637_s4 + $0x68] sm:$0xff]  ;;  %v1081_v19 = vld [vmem:[%s1637_s4 + $0xb0] sm:$0xff] }
   0xc   :  { %169 = vperm.xlu0 %1225, %v139_v9   ;;  %v1048_v15 = vld [vmem:[%s1637_s4 + $0x58] sm:$0xff]  ;;  %v1046_v16 = vld [vmem:[%s1637_s4 + $0x48] sm:$0xff]  ;;  %v1075_v20 = vld [vmem:[%s1637_s4 + $0x80] sm:$0xff] }
   0xd   :  { %v1064_v17 = vld [vmem:[%s1635_s2 + $0x28] sm:$0xff]  ;;  %v1077_v21 = vld [vmem:[%s1637_s4 + $0x90] sm:$0xff]  ;;  %v126_v22 = vld [vmem:[%s1636_s3] sm:$0xff] }
   0xe   :  { %1154 = vmatprep.mubr.msk.f32.mxu1 %vm182_vm1, %v126_v22  ;;  %v141_v23 = vld [vmem:[%s1637_s4 + $0x38] sm:$0xff]  ;;  %v140_v24 = vld [vmem:[%s1637_s4 + $0x30] sm:$0xff]  ;;  %v138_v25 = vld [vmem:[%s1637_s4 + $0x20] sm:$0xff] }
   0xf   :  { %179 = vperm.xlu1 %1226, %v141_v23   ;;  %v136_v26 = vld [vmem:[%s1637_s4 + $0x10] sm:$0xff]  ;;  %v134_v27 = vld [vmem:[%s1637_s4] sm:$0xff]  ;;  %v1080_v34 = vld [vmem:[%s1637_s4 + $0xa8] sm:$0xff] }
  0x10   :  { %159 = vperm.xlu0 %1225, %v137_v10   ;;  %v1033_v28 = vld [vmem:[%s1635_s2 + $0x10] sm:$0xff]  ;;  %v1049_v30 = vld [vmem:[%s1637_s4 + $0x60] sm:$0xff]  ;;  %v1082_v35 = vld [vmem:[%s1637_s4 + $0xb8] sm:$0xff] }
  0x11   :  { %v1051_v29 = vld [vmem:[%s1637_s4 + $0x70] sm:$0xff]  ;;  %v1045_v32 = vld [vmem:[%s1637_s4 + $0x40] sm:$0xff]  ;;  %v1076_v36 = vld [vmem:[%s1637_s4 + $0x88] sm:$0xff] }
  0x12   :  { %v1047_v31 = vld [vmem:[%s1637_s4 + $0x50] sm:$0xff]  ;;  %v1063_v33 = vld [vmem:[%s1635_s2 + $0x20] sm:$0xff]  ;;  %v1078_v37 = vld [vmem:[%s1637_s4 + $0x98] sm:$0xff]  ;;  %s1297_s2 = smov [#allocation2]  }
  0x13   :  { %174 = vperm.xlu1 %1226, %v140_v24   ;;  %v127_v46 = vld [vmem:[%s1636_s3 + $0x8] sm:$0xff]  ;;  %v128_v47 = vld [vmem:[%s1636_s3 + $0x10] sm:$0xff]  ;;  %v129_v48 = vld [vmem:[%s1636_s3 + $0x18] sm:$0xff]  ;;  %s996_s20 = sshll.u32 %s1297_s2, 4  ;;  %s997_s20 = int_to_ptr.vmem [resolvable:$true] %s996_s20 }
  0x14   :  { %149 = vperm.xlu0 %1225, %v135_v11   ;;  %v130_v49 = vld [vmem:[%s1636_s3 + $0x20] sm:$0xff]  ;;  %v131_v50 = vld [vmem:[%s1636_s3 + $0x28] sm:$0xff]  ;;  %v132_v51 = vld [vmem:[%s1636_s3 + $0x30] sm:$0xff] }
  0x15   :  { %v133_v52 = vld [vmem:[%s1636_s3 + $0x38] sm:$0xff]  ;;  %v1031_v53 = vld [vmem:[%s1634_s1 + $0x10] sm:$0xff] }
  0x16   :  { %1174 = vmatprep.mubr.msk.f32.mxu0 %vm42_vm0, %v1031_v53  ;;  %v1040_v53 = vld [vmem:[%s1636_s3 + $0x58] sm:$0xff] }
  0x17   :  { %164 = vperm.xlu1 %1226, %v138_v25  }
  0x18   :  { %359 = vperm.xlu0 %1225, %v1034_v12  }
  0x1b   :  { %154 = vperm.xlu1 %1226, %v136_v26  }
  0x1c   :  { %500 = vperm.xlu0 %1225, %v1052_v13  }
  0x1f   :  { %144 = vperm.xlu1 %1226, %v134_v27  }
  0x20   :  { %490 = vperm.xlu0 %1225, %v1050_v14  }
  0x23   :  { %354 = vperm.xlu1 %1226, %v1033_v28  }
  0x24   :  { %480 = vperm.xlu0 %1225, %v1048_v15  }
  0x27   :  { %495 = vperm.xlu1 %1226, %v1051_v29  }
  0x28   :  { %470 = vperm.xlu0 %1225, %v1046_v16  }
  0x2b   :  { %485 = vperm.xlu1 %1226, %v1049_v30  }
  0x2c   :  { %679 = vperm.xlu0 %1225, %v1064_v17  }
  0x2f   :  { %475 = vperm.xlu1 %1226, %v1047_v31  }
  0x30   :  { %805 = vperm.xlu0 %1225, %v1079_v18  }
  0x33   :  { %465 = vperm.xlu1 %1226, %v1045_v32  }
  0x34   :  { %815 = vperm.xlu0 %1225, %v1081_v19  }
  0x37   :  { %674 = vperm.xlu1 %1226, %v1063_v33  }
  0x38   :  { %785 = vperm.xlu0 %1225, %v1075_v20  }
  0x3b   :  { %810 = vperm.xlu1 %1226, %v1080_v34  }
  0x3c   :  { %795 = vperm.xlu0 %1225, %v1077_v21  }
  0x3f   :  { %820 = vperm.xlu1 %1226, %v1082_v35  }
  0x43   :  { %790 = vperm.xlu1 %1226, %v1076_v36  }
  0x47   :  { %800 = vperm.xlu1 %1226, %v1078_v37  }
  0x7f   :  { %v40_v38 = vpop.permute.xlu0 %39 }
  0x83   :  { %v35_v41 = vpop.permute.xlu0 %34 }
  0x87   :  { %v170_v60 = vpop.permute.xlu0 %169 }
  0x8a   :  { %v180_v54 = vpop.permute.xlu1 %179 }
  0x8b   :  { %v160_v25 = vpop.permute.xlu0 %159 }
  0x8e   :  { %v175_v57 = vpop.permute.xlu1 %174 }
  0x8f   :  { %v150_v37 = vpop.permute.xlu0 %149 }
  0x92   :  { %v165_v63 = vpop.permute.xlu1 %164 }
  0x96   :  { %v155_v28 = vpop.permute.xlu1 %154 }
  0xca   :  { %v1149_v39 = vpop.f32.mrf.mxu0 }
  0xcb   :  { %v121_v40 = vadd.f32 %v1149_v39, %v40_v38 }
  0xcc   :  { %v115_v42 = vpop.f32.mrf.mxu0 }
  0xcd   :  { %v125_v43 = vmax.f32 %v121_v40, 0.0  ;;  %v116_v44 = vadd.f32 %v115_v42, %v35_v41 }
  0xcf   :  { %v124_v45 = vmax.f32 %v116_v44, 0.0  ;;  %1150 = vmatprep.subr.mxu1 %v125_v43 }
  0xd0   :  { %1151 = vmatpush3.msra.mxu1 %v125_v43  ;;  %v360_v43 = vpop.permute.xlu0 %359 }
  0xd1   :  { %1152 = vmatprep.subr.mxu1 %v124_v45 }
  0xd2   :  { %1153 = vmatpush3.msra.mxu1 %v124_v45 }
  0xd3   :  { %1155 = vmatmul.mubr.msk.f32.vlgmr.msra.gmra.mxu1 %vm182_vm1, %v127_v46 }
  0xd4   :  { %1157 = vmatprep.mubr.msk.f32.mxu1 %vm182_vm1, %v128_v47 }
  0xd7   :  { %1158 = vmatmul.mubr.msk.f32.gmra.mxu1 %vm182_vm1, %v129_v48 }
  0xd8   :  { %1160 = vmatprep.mubr.msk.f32.mxu1 %vm182_vm1, %v130_v49 }
  0xdb   :  { %1161 = vmatmul.mubr.msk.f32.gmra.mxu1 %vm182_vm1, %v131_v50 }
  0xdc   :  { %1163 = vmatprep.mubr.msk.f32.mxu1 %vm182_vm1, %v132_v51  ;;  %v1038_v51 = vld [vmem:[%s1636_s3 + $0x48] sm:$0xff] }
  0xdf   :  { %1164 = vmatmul.mubr.msk.f32.gmra.mxu1 %vm182_vm1, %v133_v52  ;;  %v1039_v52 = vld [vmem:[%s1636_s3 + $0x50] sm:$0xff] }
 0x193   :  { %v1156_v55 = vpop.f32.mrf.mxu1 }
 0x194   :  { %v279_v38 = vadd.f32 %v1156_v55, %v150_v37  ;;  %v1042_v55 = vld [vmem:[%s1636_s3 + $0x68] sm:$0xff] }
 0x195   :  { %v273_v56 = vpop.f32.mrf.mxu1 }
 0x197   :  { %v1159_v58 = vpop.f32.mrf.mxu1 }
 0x198   :  { %v289_v29 = vadd.f32 %v1159_v58, %v160_v25  ;;  %v1061_v58 = vld [vmem:[%s1634_s1 + $0x20] sm:$0xff] }
 0x199   :  { %v283_v59 = vpop.f32.mrf.mxu1  ;;  %1201 = vmatprep.mubr.msk.f32.mxu1 %vm42_vm0, %v1061_v58 }
 0x19a   :  { %v284_v34 = vadd.f32 %v283_v59, %v155_v28 }
 0x19b   :  { %v1162_v61 = vpop.f32.mrf.mxu1 }
 0x19c   :  { %v299_v62 = vadd.f32 %v1162_v61, %v170_v60  ;;  %v501_v60 = vpop.permute.xlu0 %500 }
 0x19d   :  { %v293_v2 = vpop.f32.mrf.mxu1 }
 0x19e   :  { %v313_v3 = vmax.f32 %v299_v62, -5.0  ;;  %v294_v5 = vadd.f32 %v293_v2, %v165_v63 }
 0x19f   :  { %v1165_v7 = vpop.f32.mrf.mxu1 }
 0x1a0   :  { %v312_v8 = vmax.f32 %v294_v5, -5.0  ;;  %v309_v9 = vadd.f32 %v1165_v7, %v180_v54  ;;  %v317_v10 = vmin.f32 %v313_v3, 3.0  ;;  %v1041_v54 = vld [vmem:[%s1636_s3 + $0x60] sm:$0xff]  ;;  %v491_v3 = vpop.permute.xlu0 %490 }
 0x1a1   :  { %v303_v11 = vpop.f32.mrf.mxu1 }
 0x1a2   :  { %v316_v12 = vmin.f32 %v312_v8, 3.0  ;;  %v315_v13 = vmax.f32 %v309_v9, -5.0  ;;  %v304_v14 = vadd.f32 %v303_v11, %v175_v57  ;;  %v322_v17 = vmul.f32 1.442695, %v317_v10  ;;  %v1044_v57 = vld [vmem:[%s1636_s3 + $0x78] sm:$0xff] }
 0x1a4   :  { %v336_v15 = vadd.f32 %v317_v10, %v316_v12  ;;  %v319_v16 = vmin.f32 %v315_v13, 3.0  ;;  %v314_v18 = vmax.f32 %v304_v14, -5.0  ;;  %v320_v19 = vmul.f32 1.442695, %v316_v12 }
 0x1a6   :  { %v326_v20 = vmul.f32 1.442695, %v319_v16  ;;  %v318_v21 = vmin.f32 %v314_v18, 3.0 }
 0x1a8   :  { %1227 = vpow2.f32 %v326_v20  ;;  %v324_v22 = vmul.f32 1.442695, %v318_v21  ;;  %v337_v23 = vadd.f32 %v336_v15, %v318_v21 }
 0x1a9   :  { %1229 = vpow2.f32 %v322_v17 }
 0x1aa   :  { %1231 = vpow2.f32 %v320_v19  ;;  %v1497_v24 = vadd.f32 %v337_v23, %v319_v16 }
 0x1ab   :  { %1233 = vpow2.f32 %v324_v22 }
 0x1ac   :  { %v339_v20 = vrot.slane %v1497_v24, 4 }
 0x1ae   :  { %v340_v28 = vadd.f32 %v339_v20, %v1497_v24 }
 0x1b5   :  { %v1228_v26 = vpop.eup %1227 }
 0x1b6   :  { %v1230_v27 = vpop.eup %1229  ;;  %v331_v30 = vmul.f32 %v1228_v26, %v1338_v0  ;;  %v145_v0 = vpop.permute.xlu1 %144 }
 0x1b7   :  { %v1232_v31 = vpop.eup %1231  ;;  %v329_v36 = vmul.f32 %v1230_v27, %v1353_v4  ;;  %v274_v41 = vadd.f32 %v273_v56, %v145_v0  ;;  %v1032_v4 = vld [vmem:[%s1634_s1 + $0x18] sm:$0xff]  ;;  %v1043_v56 = vld [vmem:[%s1636_s3 + $0x70] sm:$0xff] }
 0x1b8   :  { %v1234_v32 = vpop.eup %1233  ;;  %v1500_v33 = vadd.f32 %v331_v30, %v289_v29  ;;  %v328_v40 = vmul.f32 %v1232_v31, %v1364_v6  ;;  %v1037_v6 = vld [vmem:[%s1636_s3 + $0x40] sm:$0xff] }
 0x1b9   :  { %v330_v35 = vmul.f32 %v1234_v32, %v1343_v1  ;;  %v1510_v42 = vadd.f32 %v329_v36, %v279_v38  ;;  %v341_v32 = vrot.slane %v340_v28, 2 }
 0x1ba   :  { %1166 = vmatprep.subr.mxu0 %v1500_v33  ;;  %v1514_v1 = vadd.f32 %v328_v40, %v274_v41  ;;  %v355_v46 = vpop.permute.xlu1 %354  ;;  %v481_v41 = vpop.permute.xlu0 %480 }
 0x1bb   :  { %1167 = vmatpush3.msra.mxu0 %v1500_v33  ;;  %v1506_v39 = vadd.f32 %v330_v35, %v284_v34  ;;  %v342_v37 = vadd.f32 %v341_v32, %v340_v28 }
 0x1bd   :  { %1168 = vmatprep.subr.mxu0 %v1506_v39  ;;  %v343_v40 = vrot.slane %v342_v37, 1 }
 0x1be   :  { %1169 = vmatpush3.msra.mxu0 %v1506_v39  ;;  %v496_v62 = vpop.permute.xlu1 %495 }
 0x1bf   :  { %1170 = vmatprep.subr.mxu0 %v1510_v42 }
 0x1c0   :  { %1171 = vmatpush3.msra.mxu0 %v1510_v42 }
 0x1c1   :  { %1172 = vmatprep.subr.mxu0 %v1514_v1 }
 0x1c2   :  { %1173 = vmatpush3.msra.mxu0 %v1514_v1  ;;  %v486_v8 = vpop.permute.xlu1 %485 }
 0x1c3   :  { %1175 = vmatmul.mubr.msk.f32.vlgmr.msra.gmra.mxu0 %vm42_vm0, %v1032_v4 }
 0x1c4   :  { %1181 = vmatprep.mubr.msk.f32.mxu0 %vm182_vm1, %v1037_v6 }
 0x1c6   :  { %v476_v24 = vpop.permute.xlu1 %475 }
 0x1ca   :  { %v466_v58 = vpop.permute.xlu1 %465 }
 0x283   :  { %v1176_v44 = vpop.f32.mrf.mxu0 }
 0x284   :  { %v440_v45 = vadd.f32 %v1176_v44, %v360_v43 }
 0x285   :  { %v434_v47 = vpop.f32.mrf.mxu0 }
 0x286   :  { %v444_v48 = vmax.f32 %v440_v45, 0.0  ;;  %v435_v49 = vadd.f32 %v434_v47, %v355_v46  ;;  %v344_v47 = vadd.f32 %v343_v40, %v342_v37 }
 0x288   :  { %v443_v50 = vmax.f32 %v435_v49, 0.0  ;;  %1177 = vmatprep.subr.mxu0 %v444_v48 }
 0x289   :  { %1178 = vmatpush3.msra.mxu0 %v444_v48 }
 0x28a   :  { %1179 = vmatprep.subr.mxu0 %v443_v50 }
 0x28b   :  { %1180 = vmatpush3.msra.mxu0 %v443_v50 }
 0x28c   :  { %1182 = vmatmul.mubr.msk.f32.vlgmr.msra.gmra.mxu0 %vm182_vm1, %v1038_v51 }
 0x28d   :  { %1184 = vmatprep.mubr.msk.f32.mxu0 %vm182_vm1, %v1039_v52 }
 0x290   :  { %1185 = vmatmul.mubr.msk.f32.gmra.mxu0 %vm182_vm1, %v1040_v53 }
 0x291   :  { %1187 = vmatprep.mubr.msk.f32.mxu0 %vm182_vm1, %v1041_v54 }
 0x294   :  { %1188 = vmatmul.mubr.msk.f32.gmra.mxu0 %vm182_vm1, %v1042_v55  ;;  %v471_v55 = vpop.permute.xlu0 %470 }
 0x295   :  { %1190 = vmatprep.mubr.msk.f32.mxu0 %vm182_vm1, %v1043_v56 }
 0x298   :  { %1191 = vmatmul.mubr.msk.f32.gmra.mxu0 %vm182_vm1, %v1044_v57 }
 0x34c   :  { %v1183_v59 = vpop.f32.mrf.mxu0 }
 0x34d   :  { %v599_v56 = vadd.f32 %v1183_v59, %v471_v55  ;;  %v1062_v59 = vld [vmem:[%s1634_s1 + $0x28] sm:$0xff] }
 0x34e   :  { %v1559_v61 = vpop.f32.mrf.mxu0 }
 0x350   :  { %v1186_v63 = vpop.f32.mrf.mxu0 }
 0x351   :  { %v609_v44 = vadd.f32 %v1186_v63, %v481_v41 }
 0x352   :  { %v603_v2 = vpop.f32.mrf.mxu0 }
 0x353   :  { %v604_v51 = vadd.f32 %v603_v2, %v476_v24  ;;  %v675_v2 = vpop.permute.xlu1 %674 }
 0x354   :  { %v1189_v5 = vpop.f32.mrf.mxu0 }
 0x355   :  { %v619_v7 = vadd.f32 %v1189_v5, %v491_v3 }
 0x356   :  { %v613_v9 = vpop.f32.mrf.mxu0 }
 0x357   :  { %v633_v10 = vmax.f32 %v619_v7, -5.0  ;;  %v614_v11 = vadd.f32 %v613_v9, %v486_v8  ;;  %v1068_v9 = vld [vmem:[%s1636_s3 + $0x88] sm:$0xff] }
 0x358   :  { %v1192_v12 = vpop.f32.mrf.mxu0 }
 0x359   :  { %v632_v13 = vmax.f32 %v614_v11, -5.0  ;;  %v629_v14 = vadd.f32 %v1192_v12, %v501_v60  ;;  %v637_v15 = vmin.f32 %v633_v10, 3.0  ;;  %v594_v60 = vadd.f32 %v1559_v61, %v466_v58  ;;  %v680_v61 = vpop.permute.xlu0 %679  ;;  %v1069_v10 = vld [vmem:[%s1636_s3 + $0x90] sm:$0xff]  ;;  %v1070_v11 = vld [vmem:[%s1636_s3 + $0x98] sm:$0xff]  ;;  %v1071_v12 = vld [vmem:[%s1636_s3 + $0xa0] sm:$0xff] }
 0x35a   :  { %v623_v16 = vpop.f32.mrf.mxu0 }
 0x35b   :  { %v636_v17 = vmin.f32 %v632_v13, 3.0  ;;  %v635_v18 = vmax.f32 %v629_v14, -5.0  ;;  %v624_v19 = vadd.f32 %v623_v16, %v496_v62  ;;  %v642_v23 = vmul.f32 1.442695, %v637_v15  ;;  %v1072_v13 = vld [vmem:[%s1636_s3 + $0xa8] sm:$0xff]  ;;  %v1073_v14 = vld [vmem:[%s1636_s3 + $0xb0] sm:$0xff] }
 0x35d   :  { %v656_v21 = vadd.f32 %v637_v15, %v636_v17  ;;  %v639_v22 = vmin.f32 %v635_v18, 3.0  ;;  %v634_v25 = vmax.f32 %v624_v19, -5.0  ;;  %v640_v26 = vmul.f32 1.442695, %v636_v17  ;;  %v1074_v15 = vld [vmem:[%s1636_s3 + $0xb8] sm:$0xff]  ;;  %v811_v19 = vpop.permute.xlu1 %810 }
 0x35f   :  { %v646_v27 = vmul.f32 1.442695, %v639_v22  ;;  %v638_v29 = vmin.f32 %v634_v25, 3.0 }
 0x361   :  { %1235 = vpow2.f32 %v646_v27  ;;  %v644_v30 = vmul.f32 1.442695, %v638_v29  ;;  %v657_v31 = vadd.f32 %v656_v21, %v638_v29  ;;  %v806_v21 = vpop.permute.xlu0 %805  ;;  %v821_v28 = vpop.permute.xlu1 %820 }
 0x362   :  { %1237 = vpow2.f32 %v642_v23 }
 0x363   :  { %1239 = vpow2.f32 %v640_v26  ;;  %v658_v34 = vadd.f32 %v657_v31, %v639_v22 }
 0x364   :  { %1241 = vpow2.f32 %v644_v30 }
 0x365   :  { %v659_v35 = vrot.slane %v658_v34, 4 }
 0x367   :  { %v660_v36 = vadd.f32 %v659_v35, %v658_v34  ;;  %v816_v34 = vpop.permute.xlu0 %815 }
 0x369   :  { %v661_v38 = vrot.slane %v660_v36, 2 }
 0x36b   :  { %v662_v0 = vadd.f32 %v661_v38, %v660_v36 }
 0x36d   :  { %v663_v6 = vrot.slane %v662_v0, 1 }
 0x36e   :  { %v1236_v4 = vpop.eup %1235 }
 0x36f   :  { %v1238_v43 = vpop.eup %1237  ;;  %v651_v45 = vmul.f32 %v1236_v4, %v1500_v33  ;;  %v664_v48 = vadd.f32 %v663_v6, %v662_v0 }
 0x370   :  { %v1240_v46 = vpop.eup %1239  ;;  %v649_v53 = vmul.f32 %v1238_v43, %v1510_v42 }
 0x371   :  { %v1242_v49 = vpop.eup %1241  ;;  %v1564_v50 = vadd.f32 %v651_v45, %v609_v44  ;;  %v1568_v54 = vadd.f32 %v664_v48, %v344_v47  ;;  %v648_v57 = vmul.f32 %v1240_v46, %v1514_v1  ;;  %v1067_v1 = vld [vmem:[%s1636_s3 + $0x80] sm:$0xff]  ;;  %v791_v48 = vpop.permute.xlu1 %790  ;;  %s1296_s3 = smov [#allocation4]  }
 0x372   :  { %v650_v52 = vmul.f32 %v1242_v49, %v1506_v39  ;;  %v1577_v39 = vadd.f32 %v649_v53, %v599_v56  ;;  %v786_v53 = vpop.permute.xlu0 %785  ;;  %s1009_s19 = sshll.u32 %s1296_s3, 4  ;;  %s1010_s19 = int_to_ptr.vmem [resolvable:$true] %s1009_s19 }
 0x373   :  { %1193 = vmatprep.subr.mxu1 %v1564_v50  ;;  %v1581_v42 = vadd.f32 %v648_v57, %v594_v60  ;;  %s1251_s21 = scalar_lea.vmem %s1010_s19, 16  ;;  %s1255_s22 = scalar_lea.vmem %s1010_s19, 32 }
 0x374   :  { %1194 = vmatpush3.msra.mxu1 %v1564_v50  ;;  %v1572_v33 = vadd.f32 %v650_v52, %v604_v51  ;;  %p1252_p0 = scmp.ne.s32.totalorder %s1010_s19, %s1251_s21  ;;  %p1256_p1 = scmp.lt.s32.totalorder %s1010_s19, %s1010_s19 }
 0x375   :  { %p1257_p2 = scmp.lt.s32.totalorder %s1255_s22, %s1251_s21 }
 0x376   :  { %1195 = vmatprep.subr.mxu1 %v1572_v33 }
 0x377   :  { %1196 = vmatpush3.msra.mxu1 %v1572_v33  ;;  %p1258_p3 = por %p1257_p2, %p1256_p1 }
 0x378   :  { %1197 = vmatprep.subr.mxu1 %v1577_v39 }
 0x379   :  { %1198 = vmatpush3.msra.mxu1 %v1577_v39  ;;  %p1259_p4 = pnand %p1258_p3, %p1252_p0 }
 0x37a   :  { %1199 = vmatprep.subr.mxu1 %v1581_v42 }
 0x37b   :  { %1200 = vmatpush3.msra.mxu1 %v1581_v42 }
 0x37c   :  { %1202 = vmatmul.mubr.msk.f32.vlgmr.msra.gmra.mxu1 %vm42_vm0, %v1062_v59 }
 0x37d   :  { %1208 = vmatprep.mubr.msk.f32.mxu1 %vm182_vm1, %v1067_v1 }
 0x43c   :  { %v1203_v62 = vpop.f32.mrf.mxu1 }
 0x43d   :  { %v760_v63 = vadd.f32 %v1203_v62, %v680_v61  ;;  %v801_v62 = vpop.permute.xlu1 %800 }
 0x43e   :  { %v754_v3 = vpop.f32.mrf.mxu1 }
 0x43f   :  { %v764_v5 = vmax.f32 %v760_v63, 0.0  ;;  %v755_v7 = vadd.f32 %v754_v3, %v675_v2 }
 0x441   :  { %v763_v8 = vmax.f32 %v755_v7, 0.0  ;;  %1204 = vmatprep.subr.mxu1 %v764_v5 }
 0x442   :  { %1205 = vmatpush3.msra.mxu1 %v764_v5 }
 0x443   :  { %1206 = vmatprep.subr.mxu1 %v763_v8 }
 0x444   :  { %1207 = vmatpush3.msra.mxu1 %v763_v8  ;;  %v796_v8 = vpop.permute.xlu0 %795 }
 0x445   :  { %1209 = vmatmul.mubr.msk.f32.vlgmr.msra.gmra.mxu1 %vm182_vm1, %v1068_v9 }
 0x446   :  { %1211 = vmatprep.mubr.msk.f32.mxu1 %vm182_vm1, %v1069_v10 }
 0x449   :  { %1212 = vmatmul.mubr.msk.f32.gmra.mxu1 %vm182_vm1, %v1070_v11 }
 0x44a   :  { %1214 = vmatprep.mubr.msk.f32.mxu1 %vm182_vm1, %v1071_v12 }
 0x44d   :  { %1215 = vmatmul.mubr.msk.f32.gmra.mxu1 %vm182_vm1, %v1072_v13 }
 0x44e   :  { %1217 = vmatprep.mubr.msk.f32.mxu1 %vm182_vm1, %v1073_v14 }
 0x451   :  { %1218 = vmatmul.mubr.msk.f32.gmra.mxu1 %vm182_vm1, %v1074_v15 }
 0x505   :  { %v1210_v16 = vpop.f32.mrf.mxu1 }
 0x506   :  { %v919_v55 = vadd.f32 %v1210_v16, %v791_v48 }
 0x507   :  { %v913_v17 = vpop.f32.mrf.mxu1 }
 0x508   :  { %v914_v60 = vadd.f32 %v913_v17, %v786_v53 }
 0x509   :  { %v1213_v18 = vpop.f32.mrf.mxu1 }
 0x50a   :  { %v929_v2 = vadd.f32 %v1213_v18, %v801_v62 }
 0x50b   :  { %v923_v20 = vpop.f32.mrf.mxu1 }
 0x50c   :  { %v924_v10 = vadd.f32 %v923_v20, %v796_v8 }
 0x50d   :  { %v1216_v22 = vpop.f32.mrf.mxu1 }
 0x50e   :  { %v939_v23 = vadd.f32 %v1216_v22, %v811_v19 }
 0x50f   :  { %v933_v25 = vpop.f32.mrf.mxu1 }
 0x510   :  { %v953_v26 = vmax.f32 %v939_v23, -5.0  ;;  %v934_v27 = vadd.f32 %v933_v25, %v806_v21 }
 0x511   :  { %v1219_v29 = vpop.f32.mrf.mxu1 }
 0x512   :  { %v957_v30 = vmin.f32 %v953_v26, 3.0  ;;  %v952_v31 = vmax.f32 %v934_v27, -5.0  ;;  %v949_v32 = vadd.f32 %v1219_v29, %v821_v28 }
 0x513   :  { %v943_v35 = vpop.f32.mrf.mxu1 }
 0x514   :  { %v962_v36 = vmul.f32 1.442695, %v957_v30  ;;  %v956_v37 = vmin.f32 %v952_v31, 3.0  ;;  %v955_v38 = vmax.f32 %v949_v32, -5.0  ;;  %v944_v40 = vadd.f32 %v943_v35, %v816_v34 }
 0x516   :  { %1243 = vpow2.f32 %v962_v36  ;;  %v960_v0 = vmul.f32 1.442695, %v956_v37  ;;  %v959_v41 = vmin.f32 %v955_v38, 3.0  ;;  %v954_v4 = vmax.f32 %v944_v40, -5.0 }
 0x517   :  { %v976_v43 = vadd.f32 %v957_v30, %v956_v37 }
 0x518   :  { %1245 = vpow2.f32 %v960_v0  ;;  %v966_v6 = vmul.f32 1.442695, %v959_v41  ;;  %v958_v24 = vmin.f32 %v954_v4, 3.0 }
 0x51a   :  { %1247 = vpow2.f32 %v966_v6  ;;  %v964_v44 = vmul.f32 1.442695, %v958_v24  ;;  %v977_v45 = vadd.f32 %v976_v43, %v958_v24 }
 0x51c   :  { %1249 = vpow2.f32 %v964_v44  ;;  %v978_v46 = vadd.f32 %v977_v45, %v959_v41 }
 0x51e   :  { %v979_v47 = vrot.slane %v978_v46, 4 }
 0x520   :  { %v980_v49 = vadd.f32 %v979_v47, %v978_v46 }
 0x522   :  { %v981_v52 = vrot.slane %v980_v49, 2 }
 0x523   :  { %v1244_v51 = vpop.eup %1243 }
 0x524   :  { %v969_v56 = vmul.f32 %v1244_v51, %v1577_v39  ;;  %v982_v58 = vadd.f32 %v981_v52, %v980_v49 }
 0x525   :  { %v1246_v57 = vpop.eup %1245 }
 0x526   :  { %v968_v59 = vmul.f32 %v1246_v57, %v1581_v42  ;;  %v973_v1 = vadd.f32 %v969_v56, %v919_v55  ;;  %v983_v63 = vrot.slane %v982_v58, 1 }
 0x527   :  { %v1248_v61 = vpop.eup %1247 }
 0x528   :  { %v971_v3 = vmul.f32 %v1248_v61, %v1564_v50  ;;  %v972_v5 = vadd.f32 %v968_v59, %v914_v60  ;;  %987 = vst [vmem:[#allocation2 + $0x8] sm:$0xff] %v973_v1  ;;  %v984_v7 = vadd.f32 %v983_v63, %v982_v58 }
 0x529   :  { %v1250_v39 = vpop.eup %1249 }
 0x52a   :  { %v975_v9 = vadd.f32 %v971_v3, %v929_v2  ;;  %986 = vst [vmem:[#allocation2] sm:$0xff] %v972_v5  ;;  %v970_v42 = vmul.f32 %v1250_v39, %v1572_v33  ;;  %v985_v11 = vadd.f32 %v984_v7, %v1568_v54 }
 0x52c   :  { %989 = vst [vmem:[#allocation2 + $0x18] sm:$0xff] %v975_v9  ;;  %v974_v50 = vadd.f32 %v970_v42, %v924_v10  ;;  %990 = vst [vmem:[#allocation4] sm:$0x1] %v985_v11 }
 0x52d   :  { %1262 = shalt.err (!%p1259_p4)
}
 0x52e   :  { %1012 = dma.vmem_to_hbm [thread:$0]  %s1010_s19, 16, %s1639_s6, [#allocation5]   ;;  %988 = vst [vmem:[#allocation2 + $0x10] sm:$0xff] %v974_v50 }
 0x52f   :  { %s1271_s24 = scalar_lea.vmem %s997_s20, 512  ;;  %p1276_p6 = scmp.lt.s32.totalorder %s997_s20, %s997_s20 }
 0x530   :  { %p1272_p5 = scmp.ne.s32.totalorder %s997_s20, %s1271_s24  ;;  %p1277_p7 = scmp.lt.s32.totalorder %s1271_s24, %s1271_s24 }
 0x532   :  { %p1278_p8 = por %p1277_p7, %p1276_p6 }
 0x534   :  { %p1279_p9 = pnand %p1278_p8, %p1272_p5 }
 0x536   :  { %1282 = shalt.err (!%p1279_p9)
}
 0x537   :  { %s1298_s25 = smov 128   ;;  %s1299_s26 = smov 8  }
 0x538   :  { %1002 = dma.vmem_to_hbm [thread:$0]  %s997_s20, 512, %s1638_s5, [#allocation3], %s1298_s25, %s1298_s25, %s1299_s26  }
 0x539   :  { %1291 = dma.done.wait [#allocation3], 512  }
 0x53a   :  { %1292 = vsyncadd [#allocation3], 4294966784 }
 0x53b   :  { %1293 = dma.done.wait [#allocation5], 16  }
 0x53c   :  { %1294 = vsyncadd [#allocation5], 4294967280 }
 0x53d   :  { %1019 = vsyncpa [#allocation3], 1 }
 0x53e   :  { %1020 = vsyncpa [#allocation5], 1 }

</bundles_post_ra>
